<compile_context>
chip_gen: v5e
topology: v5e:2x2
jax: 0.10.0
libtpu: 0.0.40
codegen_flags: <defaults>
</compile_context>

<pallas_src>
import functools

import jax
import jax.numpy as jnp
from jax.experimental import pallas as pl
from jax.experimental.pallas import tpu as pltpu


def _row_indices(h):
    # Match PyTorch exactly: cell = h / 12 (float), k = int(i * cell) (truncate).
    # Do NOT "clean up" to integer division: float truncation can differ.
    cell = h / 12
    return tuple(int(i * cell) for i in range(12))


def _pad_to(v, m):
    return ((v + m - 1) // m) * m


def _vmem_budget():
    # Per-generation VMEM budget (bytes of double-buffered in+out tiles) and a
    # matching scoped-VMEM limit for the compiler.
    cap = 64 << 20  # conservative fallback (v7x per-TC physical VMEM)
    try:
        info = pltpu.get_tpu_info()
        cap = int(getattr(info, "vmem_capacity_bytes", cap))
    except Exception:
        pass
    budget = min(cap // 2, 48 << 20)          # v5e/v6e: 48 MiB, v7x: 32 MiB
    vmem_limit = min(cap * 3 // 4, budget * 2)
    return budget, int(max(vmem_limit, budget))


def _pick_tile(nc, per_row_bytes, budget):
    # Largest NC-tile whose double-buffered in+out footprint fits the budget.
    t = max(1, budget // max(1, per_row_bytes))
    t = min(t, nc)
    # Keep >=2 grid steps so both v7x TensorCores get work and the pipeline can
    # overlap DMA with the copies (only when nc is big enough to stay aligned).
    if nc >= 16:
        t = min(t, nc // 2)
    if t < nc:
        if t > 8:
            t -= t % 8          # sublane-aligned second-to-last block dim
        elif t < 8:
            t = min(8, nc)      # round up; Pallas clips the partial edge block
    return int(max(1, t))


def _make_row_map(k):
    # Static row index baked into the index_map (block size 1 on the squeezed
    # H dim, so the block index equals the element index).
    def imap(i):
        return (i, k, 0)
    return imap


def _gather_kernel(*refs, w):
    # refs = (x_row0, ..., x_row11, o_ref); each x_row_i is a dense (t, w) tile
    # already row-selected by its BlockSpec; o_ref is the lane-dense (t, 12*w)
    # output slab.  Twelve static full-width copies, one HBM writeback per tile.
    o_ref = refs[-1]
    for i in range(12):
        o_ref[:, i * w:(i + 1) * w] = refs[i][...]


def _dense_kernel(x_ref, o_ref, *, row_idx, w):
    # x_ref: (t, h*w) lane-dense tile; o_ref: (t, 12*w).  Row k is the static
    # lane range [k*w, (k+1)*w) -- plain vector loads/stores, no sublane gather.
    for i, k in enumerate(row_idx):
        o_ref[:, i * w:(i + 1) * w] = x_ref[:, k * w:(k + 1) * w]


def idx_layer(x):
    n, c, h, w = x.shape
    nc = n * c
    row_idx = _row_indices(h)
    itemsize = jnp.dtype(x.dtype).itemsize
    budget, vmem_limit = _vmem_budget()

    # Gather (DMA-side row selection) wins whenever the per-row DMA segment is
    # reasonably efficient; reading all H rows inflates HBM traffic by H/12.
    seg_bytes = w * itemsize
    use_gather = (h > 24 and seg_bytes >= 512) or (h >= 48 and seg_bytes >= 128)

    if use_gather:
        xf = x.reshape(nc, h, w)  # free, contiguous reshape
        per_row = (12 * _pad_to(w, 128) + _pad_to(12 * w, 128)) * itemsize * 2
        t = _pick_tile(nc, per_row, budget)
        out = pl.pallas_call(
            functools.partial(_gather_kernel, w=w),
            out_shape=jax.ShapeDtypeStruct((nc, 12 * w), x.dtype),
            grid=(pl.cdiv(nc, t),),
            in_specs=[pl.BlockSpec((t, None, w), _make_row_map(k))
                      for k in row_idx],
            out_specs=pl.BlockSpec((t, 12 * w), lambda i: (i, 0)),
            compiler_params=pltpu.CompilerParams(
                dimension_semantics=("parallel",),
                vmem_limit_bytes=vmem_limit),
            cost_estimate=pl.CostEstimate(
                flops=0, transcendentals=0,
                bytes_accessed=int(2 * nc * 12 * w * itemsize)),
        )(*([xf] * 12))
        return out.reshape(n, c, 12 * w)

    # Dense streaming path (small-H / narrow-W regime, incl. the test shape):
    # lane-dense (t, h*w) input tiles, lane-dense (t, 12*w) output tiles.
    xf = x.reshape(nc, h * w)  # free, contiguous reshape
    per_row = (_pad_to(h * w, 128) + _pad_to(12 * w, 128)) * itemsize * 2
    t = _pick_tile(nc, per_row, budget)
    out = pl.pallas_call(
        functools.partial(_dense_kernel, row_idx=row_idx, w=w),
        out_shape=jax.ShapeDtypeStruct((nc, 12 * w), x.dtype),
        grid=(pl.cdiv(nc, t),),
        in_specs=[pl.BlockSpec((t, h * w), lambda i: (i, 0))],
        out_specs=pl.BlockSpec((t, 12 * w), lambda i: (i, 0)),
        compiler_params=pltpu.CompilerParams(
            dimension_semantics=("parallel",),
            vmem_limit_bytes=vmem_limit),
        cost_estimate=pl.CostEstimate(
            flops=0, transcendentals=0,
            bytes_accessed=int((nc * h * w + nc * 12 * w) * itemsize)),
    )(xf)
    # torch.cat over 12 slices of width W along dim 2 == this reshape (a view).
    return out.reshape(n, c, 12 * w)


def idx_layer_ref(x):
    # Pure-JAX reference mirroring the PyTorch module exactly.
    n, c, h, w = x.shape
    cell = h / 12
    rows = [x[:, :, int(i * cell), :] for i in range(12)]
    return jnp.concatenate(rows, axis=2)


if __name__ == "__main__":
    key = jax.random.PRNGKey(0)
    k_dense, k_gather = jax.random.split(key)

    # 1) Dense path (small H, narrow W) -- the module's typical small input.
    x1 = jax.random.normal(k_dense, (2, 4, 16, 16), dtype=jnp.float32)
    out1 = jax.block_until_ready(idx_layer(x1))
    ref1 = jax.block_until_ready(idx_layer_ref(x1))
    assert out1.shape == (2, 4, 12 * 16), out1.shape
    assert out1.dtype == x1.dtype
    assert bool(jnp.array_equal(out1, ref1)), "dense path mismatch vs reference"

    # 2) Gather path (odd H, DMA-efficient W) -- exercises the 12 static
    #    row-selecting BlockSpecs and the float-truncated row indices.
    x2 = jax.random.normal(k_gather, (2, 8, 49, 128), dtype=jnp.float32)
    out2 = jax.block_until_ready(idx_layer(x2))
    ref2 = jax.block_until_ready(idx_layer_ref(x2))
    assert out2.shape == (2, 8, 12 * 128), out2.shape
    assert out2.dtype == x2.dtype
    assert bool(jnp.array_equal(out2, ref2)), "gather path mismatch vs reference"

    print("KERNEL_OK")
</pallas_src>

<mosaic_0001>
module attributes {stable_mosaic.version = 11 : i64} {
  func.func @_dense_kernel(%arg0: i32, %arg1: memref<8x256xf32, #tpu.memory_space<vmem>>, %arg2: memref<8x192xf32, #tpu.memory_space<vmem>>) attributes {dimension_semantics = [#tpu.dimension_semantics<parallel>], iteration_bounds = array<i64: 1>, scalar_prefetch = 0 : i64, scratch_operands = 0 : i64, tpu.core_type = #tpu.core_type<tc>, window_params = [{transform_indices = @transform_0, window_bounds = array<i64: 8, 256>}, {transform_indices = @transform_1, window_bounds = array<i64: 8, 192>}]} {
    %c0 = arith.constant 0 : index
    %c0_0 = arith.constant 0 : index
    %0 = vector.load %arg1[%c0, %c0_0] : memref<8x256xf32, #tpu.memory_space<vmem>>, vector<8x16xf32>
    %c0_1 = arith.constant 0 : index
    %c0_2 = arith.constant 0 : index
    %1 = vector.load %arg2[%c0_1, %c0_2] : memref<8x192xf32, #tpu.memory_space<vmem>>, vector<8x16xf32>
    tpu.vector_store %arg2[%c0_1, %c0_2], %0 {strides = array<i32>} : memref<8x192xf32, #tpu.memory_space<vmem>>, vector<8x16xf32>,
    %c0_3 = arith.constant 0 : index
    %c16 = arith.constant 16 : index
    %2 = vector.load %arg1[%c0_3, %c16] : memref<8x256xf32, #tpu.memory_space<vmem>>, vector<8x16xf32>
    %c0_4 = arith.constant 0 : index
    %c16_5 = arith.constant 16 : index
    %3 = vector.load %arg2[%c0_4, %c16_5] : memref<8x192xf32, #tpu.memory_space<vmem>>, vector<8x16xf32>
    tpu.vector_store %arg2[%c0_4, %c16_5], %2 {strides = array<i32>} : memref<8x192xf32, #tpu.memory_space<vmem>>, vector<8x16xf32>,
    %c0_6 = arith.constant 0 : index
    %c32 = arith.constant 32 : index
    %4 = vector.load %arg1[%c0_6, %c32] : memref<8x256xf32, #tpu.memory_space<vmem>>, vector<8x16xf32>
    %c0_7 = arith.constant 0 : index
    %c32_8 = arith.constant 32 : index
    %5 = vector.load %arg2[%c0_7, %c32_8] : memref<8x192xf32, #tpu.memory_space<vmem>>, vector<8x16xf32>
    tpu.vector_store %arg2[%c0_7, %c32_8], %4 {strides = array<i32>} : memref<8x192xf32, #tpu.memory_space<vmem>>, vector<8x16xf32>,
    %c0_9 = arith.constant 0 : index
    %c64 = arith.constant 64 : index
    %6 = vector.load %arg1[%c0_9, %c64] : memref<8x256xf32, #tpu.memory_space<vmem>>, vector<8x16xf32>
    %c0_10 = arith.constant 0 : index
    %c48 = arith.constant 48 : index
    %7 = vector.load %arg2[%c0_10, %c48] : memref<8x192xf32, #tpu.memory_space<vmem>>, vector<8x16xf32>
    tpu.vector_store %arg2[%c0_10, %c48], %6 {strides = array<i32>} : memref<8x192xf32, #tpu.memory_space<vmem>>, vector<8x16xf32>,
    %c0_11 = arith.constant 0 : index
    %c80 = arith.constant 80 : index
    %8 = vector.load %arg1[%c0_11, %c80] : memref<8x256xf32, #tpu.memory_space<vmem>>, vector<8x16xf32>
    %c0_12 = arith.constant 0 : index
    %c64_13 = arith.constant 64 : index
    %9 = vector.load %arg2[%c0_12, %c64_13] : memref<8x192xf32, #tpu.memory_space<vmem>>, vector<8x16xf32>
    tpu.vector_store %arg2[%c0_12, %c64_13], %8 {strides = array<i32>} : memref<8x192xf32, #tpu.memory_space<vmem>>, vector<8x16xf32>,
    %c0_14 = arith.constant 0 : index
    %c96 = arith.constant 96 : index
    %10 = vector.load %arg1[%c0_14, %c96] : memref<8x256xf32, #tpu.memory_space<vmem>>, vector<8x16xf32>
    %c0_15 = arith.constant 0 : index
    %c80_16 = arith.constant 80 : index
    %11 = vector.load %arg2[%c0_15, %c80_16] : memref<8x192xf32, #tpu.memory_space<vmem>>, vector<8x16xf32>
    tpu.vector_store %arg2[%c0_15, %c80_16], %10 {strides = array<i32>} : memref<8x192xf32, #tpu.memory_space<vmem>>, vector<8x16xf32>,
    %c0_17 = arith.constant 0 : index
    %c128 = arith.constant 128 : index
    %12 = vector.load %arg1[%c0_17, %c128] : memref<8x256xf32, #tpu.memory_space<vmem>>, vector<8x16xf32>
    %c0_18 = arith.constant 0 : index
    %c96_19 = arith.constant 96 : index
    %13 = vector.load %arg2[%c0_18, %c96_19] : memref<8x192xf32, #tpu.memory_space<vmem>>, vector<8x16xf32>
    tpu.vector_store %arg2[%c0_18, %c96_19], %12 {strides = array<i32>} : memref<8x192xf32, #tpu.memory_space<vmem>>, vector<8x16xf32>,
    %c0_20 = arith.constant 0 : index
    %c144 = arith.constant 144 : index
    %14 = vector.load %arg1[%c0_20, %c144] : memref<8x256xf32, #tpu.memory_space<vmem>>, vector<8x16xf32>
    %c0_21 = arith.constant 0 : index
    %c112 = arith.constant 112 : index
    %15 = vector.load %arg2[%c0_21, %c112] : memref<8x192xf32, #tpu.memory_space<vmem>>, vector<8x16xf32>
    tpu.vector_store %arg2[%c0_21, %c112], %14 {strides = array<i32>} : memref<8x192xf32, #tpu.memory_space<vmem>>, vector<8x16xf32>,
    %c0_22 = arith.constant 0 : index
    %c160 = arith.constant 160 : index
    %16 = vector.load %arg1[%c0_22, %c160] : memref<8x256xf32, #tpu.memory_space<vmem>>, vector<8x16xf32>
    %c0_23 = arith.constant 0 : index
    %c128_24 = arith.constant 128 : index
    %17 = vector.load %arg2[%c0_23, %c128_24] : memref<8x192xf32, #tpu.memory_space<vmem>>, vector<8x16xf32>
    tpu.vector_store %arg2[%c0_23, %c128_24], %16 {strides = array<i32>} : memref<8x192xf32, #tpu.memory_space<vmem>>, vector<8x16xf32>,
    %c0_25 = arith.constant 0 : index
    %c192 = arith.constant 192 : index
    %18 = vector.load %arg1[%c0_25, %c192] : memref<8x256xf32, #tpu.memory_space<vmem>>, vector<8x16xf32>
    %c0_26 = arith.constant 0 : index
    %c144_27 = arith.constant 144 : index
    %19 = vector.load %arg2[%c0_26, %c144_27] : memref<8x192xf32, #tpu.memory_space<vmem>>, vector<8x16xf32>
    tpu.vector_store %arg2[%c0_26, %c144_27], %18 {strides = array<i32>} : memref<8x192xf32, #tpu.memory_space<vmem>>, vector<8x16xf32>,
    %c0_28 = arith.constant 0 : index
    %c208 = arith.constant 208 : index
    %20 = vector.load %arg1[%c0_28, %c208] : memref<8x256xf32, #tpu.memory_space<vmem>>, vector<8x16xf32>
    %c0_29 = arith.constant 0 : index
    %c160_30 = arith.constant 160 : index
    %21 = vector.load %arg2[%c0_29, %c160_30] : memref<8x192xf32, #tpu.memory_space<vmem>>, vector<8x16xf32>
    tpu.vector_store %arg2[%c0_29, %c160_30], %20 {strides = array<i32>} : memref<8x192xf32, #tpu.memory_space<vmem>>, vector<8x16xf32>,
    %c0_31 = arith.constant 0 : index
    %c224 = arith.constant 224 : index
    %22 = vector.load %arg1[%c0_31, %c224] : memref<8x256xf32, #tpu.memory_space<vmem>>, vector<8x16xf32>
    %c0_32 = arith.constant 0 : index
    %c176 = arith.constant 176 : index
    %23 = vector.load %arg2[%c0_32, %c176] : memref<8x192xf32, #tpu.memory_space<vmem>>, vector<8x16xf32>
    tpu.vector_store %arg2[%c0_32, %c176], %22 {strides = array<i32>} : memref<8x192xf32, #tpu.memory_space<vmem>>, vector<8x16xf32>,
    return
  }
  func.func @transform_0(%arg0: i32) -> (i32, i32) {
    %c0_i32 = arith.constant 0 : i32
    %c0_i32_0 = arith.constant 0 : i32
    return %arg0, %c0_i32 : i32, i32
  }
  func.func @transform_1(%arg0: i32) -> (i32, i32) {
    %c0_i32 = arith.constant 0 : i32
    %c0_i32_0 = arith.constant 0 : i32
    return %arg0, %c0_i32 : i32, i32
  }
}

</mosaic_0001>

<bundles_post_ra>
// kernel: tpu_custom_call.1
= control target key start
LH: loop header
LB: loop body
LE: loop exit
PB: predicated region body
PF: predicated region fallthrough
CT: control target
= control target key end

     0   :  { %6 = vsyncpa [#allocation3], 0  ;;  %s192_s0 = inlined_call_operand.hbm [shape: f32[8,256], index: 0, kind: input, shape index: {}]   ;;  %s193_s1 = inlined_call_operand.hbm [shape: f32[8,192], index: 1, kind: output, shape index: {}]  }
   0x1   :  { %7 = vsyncpa [#allocation4], 0  ;;  %s13_s8 = sshll.u32 %s192_s0, 4  ;;  %s165_s9 = smov [#allocation2]   ;;  %s14_s8 = int_to_ptr.hbm [resolvable:$true] %s13_s8 }
   0x2   :  { %s15_s10 = sshll.u32 %s165_s9, 4  ;;  %s16_s10 = int_to_ptr.vmem [resolvable:$true] %s15_s10 }
   0x3   :  { %18 = dma.hbm_to_vmem [thread:$0]  %s14_s8, 256, %s16_s10, [#allocation3]  }
   0x4   :  { %161 = dma.done.wait [#allocation3], 256  }
   0x5   :  { %162 = vsyncadd [#allocation3], 4294967040  ;;  %vm24_vm0 = vcmask 130048   ;;  %v67_v0 = vld [vmem:[#allocation2 + $0x8] sm:$0xff]  ;;  %v32_v1 = vld [vmem:[#allocation2] sm:$0xff]  ;;  %s166_s11 = smov 96  }
   0x6   :  { %69 = vrot.lane.b32.xlu1 %v67_v0, %s166_s11  ;;  %s167_s12 = smov 112   ;;  %25 = vst.msk [vmem:[#allocation5] sm:$0xff] %vm24_vm0, %v32_v1  ;;  %s168_s13 = smov 80   ;;  %vm27_vm1 = vcmask 261248   ;;  %vm30_vm2 = vcmask 392448   ;;  %vm37_vm3 = vcmask 523648  }
   0x7   :  { %34 = vrot.lane.b32.xlu0 %v32_v1, %s167_s12  ;;  %75 = vrot.lane.b32.xlu2 %v67_v0, %s168_s13  ;;  %28 = vst.msk [vmem:[#allocation5] sm:$0xff] %vm27_vm1, %v32_v1  ;;  %vm44_vm4 = vcmask 654848   ;;  %vm51_vm5 = vcmask 786048   ;;  %vm58_vm6 = vcmask 917248   ;;  %s169_s0 = smov [#allocation5]   ;;  %s98_s17 = sshll.u32 %s193_s1, 4  ;;  %s99_s17 = int_to_ptr.hbm [resolvable:$true] %s98_s17 }
   0x8   :  { %31 = vst.msk [vmem:[#allocation5] sm:$0xff] %vm30_vm2, %v32_v1  ;;  %s96_s14 = sshll.u32 %s169_s0, 4  ;;  %vm65_vm7 = vcmask 1048448   ;;  %s97_s14 = int_to_ptr.vmem [resolvable:$true] %s96_s14 }
   0xe   :  { %48 = vrot.lane.b32.xlu1 %v32_v1, %s167_s12 }
   0xf   :  { %41 = vrot.lane.b32.xlu0 %v32_v1, %s167_s12  ;;  %55 = vrot.lane.b32.xlu2 %v67_v0, %s166_s11 }
  0x16   :  { %62 = vrot.lane.b32.xlu1 %v67_v0, %s166_s11 }
  0x17   :  { %81 = vrot.lane.b32.xlu0 %v67_v0, %s168_s13  ;;  %87 = vrot.lane.b32.xlu2 %v67_v0, %s168_s13 }
  0x61   :  { %v76_v2 = vpop.permute.xlu2 %75 }
  0x69   :  { %v56_v5 = vpop.permute.xlu2 %55 }
  0x71   :  { %v88_v8 = vpop.permute.xlu2 %87 }
  0x78   :  { %v70_v3 = vpop.permute.xlu1 %69 }
  0x79   :  { %v35_v4 = vpop.permute.xlu0 %34  ;;  %72 = vst.msk [vmem:[#allocation5 + $0x8] sm:$0xff] %vm24_vm0, %v70_v3 }
  0x7a   :  { %38 = vst.msk [vmem:[#allocation5] sm:$0xff] %vm37_vm3, %v35_v4 }
  0x7b   :  { %78 = vst.msk [vmem:[#allocation5 + $0x8] sm:$0xff] %vm27_vm1, %v76_v2 }
  0x80   :  { %v49_v7 = vpop.permute.xlu1 %48 }
  0x81   :  { %v42_v6 = vpop.permute.xlu0 %41 }
  0x82   :  { %45 = vst.msk [vmem:[#allocation5] sm:$0xff] %vm44_vm4, %v42_v6 }
  0x83   :  { %52 = vst.msk [vmem:[#allocation5] sm:$0xff] %vm51_vm5, %v49_v7 }
  0x84   :  { %59 = vst.msk [vmem:[#allocation5] sm:$0xff] %vm58_vm6, %v56_v5 }
  0x88   :  { %v63_v10 = vpop.permute.xlu1 %62 }
  0x89   :  { %v82_v9 = vpop.permute.xlu0 %81  ;;  %66 = vst.msk [vmem:[#allocation5] sm:$0xff] %vm65_vm7, %v63_v10 }
  0x8a   :  { %84 = vst.msk [vmem:[#allocation5 + $0x8] sm:$0xff] %vm30_vm2, %v82_v9 }
  0x8b   :  { %90 = vst.msk [vmem:[#allocation5 + $0x8] sm:$0xff] %vm37_vm3, %v88_v8 }
  0x8c   :  { %101 = dma.vmem_to_hbm [thread:$0]  %s97_s14, 256, %s99_s17, [#allocation4]  }
  0x8d   :  { %163 = dma.done.wait [#allocation4], 256  }
  0x8e   :  { %164 = vsyncadd [#allocation4], 4294967040 }
  0x8f   :  { %106 = vsyncpa [#allocation3], 1 }
  0x90   :  { %107 = vsyncpa [#allocation4], 1 }

</bundles_post_ra>
